<compile_context>
chip_gen: v7x
topology: tpu7x:2x2x1
jax: 0.10.0
libtpu: 0.0.40
codegen_flags: <defaults>
</compile_context>

<pallas_src>
import functools

import jax
import jax.numpy as jnp
from jax.experimental import pallas as pl
from jax.experimental.pallas import tpu as pltpu


def _round_up(n, m):
    return ((n + m - 1) // m) * m


def _skip_router_kernel(x_ref, w2_ref, out_ref, *, Q, E):
    """One batch-block of the router.

    x_ref  : (BB, Sb, D)  rows 0..Sb-1 of each sequence (Sb = round_up(Q, 8), clipped to S)
    w2_ref : (D, 2E)      columns [0:E] = W[:, :D].T, columns [E:2E] = W[:, D:].T
    out_ref: (BB, T, E)   T = Q - 1
    """
    BB, Sb, D = x_ref.shape

    # Single fused MXU matmul over every row of the block:
    #   y[b, q, 0:E]  = x[b, q] @ W[:, :D].T   (image-weight products)
    #   y[b, q, E:2E] = x[b, q] @ W[:, D:].T   (text-weight products)
    # Sb is a multiple of 8 (or the full sequence), so collapsing (BB, Sb) is a
    # layout-free reshape — no VMEM relayout copy before the MXU.
    rows = x_ref[...].reshape(BB * Sb, D)
    y = jnp.dot(rows, w2_ref[...], preferred_element_type=jnp.float32)  # (BB*Sb, 2E)
    y3 = y.reshape(BB, Sb, 2 * E)

    img = y3[:, 0:1, :]   # (BB, 1, 2E) image token's products
    txt = y3[:, 1:Q, :]   # (BB, T, 2E) text tokens' products

    if E == 2:
        # softmax over 2 classes == sigmoid of the logit difference (exact identity);
        # no cross-lane max/sum reductions, one exp on the EUP.
        d = (txt[:, :, E + 1:E + 2] - txt[:, :, E:E + 1]) + (
            img[:, :, 1:2] - img[:, :, 0:1]
        )                                                        # (BB, T, 1)
        p1 = pl.reciprocal(1.0 + jnp.exp(-d), approx=False)      # (BB, T, 1)
        p0 = 1.0 - p1
        out = jnp.concatenate([p0, p1], axis=-1)                 # (BB, T, 2)
    else:
        # General-E fallback: numerically-stable softmax over the expert axis.
        logits = txt[:, :, E:] + img[:, :, :E]                   # (BB, T, E)
        m = jnp.max(logits, axis=-1, keepdims=True)
        e = jnp.exp(logits - m)
        out = e * pl.reciprocal(jnp.sum(e, axis=-1, keepdims=True), approx=False)

    out_ref[...] = out.astype(out_ref.dtype)


def skip_router_forward(x, question_mask, weight, *, block_b=None):
    """x: (B, S, D) (f32 or bf16); question_mask: (B, Q) (only its static shape is used);
    weight: (E, 2*D) — the nn.Linear(2D, E, bias=False) weight.  Returns (B, Q-1, E)."""
    B, S, D = x.shape
    Q = int(question_mask.shape[1])
    T = Q - 1
    E = weight.shape[0]
    assert weight.shape[1] == 2 * D, "weight must be (E, 2*D)"
    assert 2 <= Q <= S, "need at least one text token and Q <= sequence length"

    itemsize = jnp.dtype(x.dtype).itemsize

    # Fused weight: one (D, 2E) MXU operand reproducing concat-then-linear exactly.
    # Cast to the activation dtype (bf16 activations stay bf16; kernel accumulates f32).
    w2 = jnp.concatenate([weight[:, :D].T, weight[:, D:].T], axis=1).astype(x.dtype)

    # Only DMA the rows the module actually uses: round Q up to the sublane
    # multiple (8) instead of falling back to the whole sequence.
    Sb = min(S, _round_up(Q, 8))

    # --- Per-generation VMEM budget -------------------------------------------
    try:
        vmem_cap = getattr(pltpu.get_tpu_info(), "vmem_capacity_bytes",
                           64 * 1024 * 1024)
    except Exception:                              # robust off-TPU / API drift
        vmem_cap = 64 * 1024 * 1024
    if vmem_cap >= 96 * 1024 * 1024:               # v5e / v6e: 128 MiB VMEM per TC
        vmem_budget = 20 * 1024 * 1024
        vmem_limit = 64 * 1024 * 1024
    else:                                          # v7x: 64 MiB VMEM per TC
        vmem_budget = 8 * 1024 * 1024
        vmem_limit = 32 * 1024 * 1024

    # --- block_b sized against the REAL per-batch VMEM footprint ---------------
    if block_b is None:
        Sb_pad, T_pad = _round_up(Sb, 8), _round_up(T, 8)
        D_pad = _round_up(D, 128)
        E_pad, E2_pad = _round_up(E, 128), _round_up(2 * E, 128)
        in_blk = Sb_pad * D_pad * itemsize          # x pipeline block, per batch
        out_blk = T_pad * E_pad * itemsize          # out pipeline block, per batch
        # Lane-padded f32 intermediates (matmul result + ~6 small temporaries:
        # img/txt slices, logit diff, p0, p1, out); these dominate when D is small.
        interm = Sb_pad * E2_pad * 4 + 6 * T_pad * E2_pad * 4
        per_batch = 2 * (in_blk + out_blk) + interm  # x2: double-buffered blocks
        block_b = max(1, min(B, vmem_budget // max(per_batch, 1)))
        # Keep at least two grid steps: v7x shards "parallel" steps across its
        # 2 TensorCores (grid_b == 1 would idle one), and >= 2 steps let the
        # pipeline overlap DMA with compute everywhere else.
        if B >= 2:
            block_b = min(block_b, pl.cdiv(B, 2))
    # Ragged last block is handled by Pallas (reads padded, writes dropped), so
    # no exact-divisor search and no block_b == 1 cliff for prime B.
    grid_b = pl.cdiv(B, block_b)

    kernel = functools.partial(_skip_router_kernel, Q=Q, E=E)

    return pl.pallas_call(
        kernel,
        out_shape=jax.ShapeDtypeStruct((B, T, E), x.dtype),
        grid_spec=pltpu.PrefetchScalarGridSpec(
            num_scalar_prefetch=0,
            grid=(grid_b,),
            in_specs=[
                pl.BlockSpec((block_b, Sb, D), lambda b: (b, 0, 0)),   # x rows 0..Sb-1
                pl.BlockSpec((D, 2 * E), lambda b: (0, 0)),            # fused weight
            ],
            out_specs=pl.BlockSpec((block_b, T, E), lambda b: (b, 0, 0)),
        ),
        compiler_params=pltpu.CompilerParams(
            dimension_semantics=("parallel",),      # batch axis shards across TCs
            vmem_limit_bytes=vmem_limit,
        ),
    )(x, w2)


def skip_router_ref(x, question_mask, weight):
    """Pure-JAX reference matching the PyTorch module exactly."""
    Q = question_mask.shape[1]
    img = x[:, 0:1, :]
    txt = x[:, 1:Q, :]
    T = txt.shape[1]
    cat = jnp.concatenate([jnp.repeat(img, T, axis=1), txt], axis=-1)  # (B, T, 2D)
    logits = jnp.einsum("btk,ek->bte", cat, weight)
    return jax.nn.softmax(logits, axis=-1)


if __name__ == "__main__":
    # Small shapes consistent with the module (in_features=D, out_features=E).
    B, S, D, Q, E = 2, 16, 32, 8, 2

    key = jax.random.PRNGKey(0)
    kx, kw = jax.random.split(key)
    x = jax.random.normal(kx, (B, S, D), dtype=jnp.float32)
    # question_mask values are unused by forward (only its shape matters).
    question_mask = jnp.ones((B, Q), dtype=jnp.int32)
    # Deterministic init of nn.Linear(2D -> E, bias=False) weight, shape (E, 2D).
    weight = jax.random.normal(kw, (E, 2 * D), dtype=jnp.float32) * (1.0 / (2 * D) ** 0.5)

    out = skip_router_forward(x, question_mask, weight)
    out = jax.block_until_ready(out)

    ref = skip_router_ref(x, question_mask, weight)
    assert out.shape == (B, Q - 1, E), out.shape
    assert jnp.allclose(out, ref, atol=1e-5, rtol=1e-5), float(jnp.max(jnp.abs(out - ref)))

    print("KERNEL_OK")
</pallas_src>

<mosaic_0001>
module attributes {stable_mosaic.version = 11 : i64} {
  func.func @_skip_router_kernel(%arg0: i32, %arg1: memref<1x8x32xf32, #tpu.memory_space<vmem>>, %arg2: memref<32x4xf32, #tpu.memory_space<vmem>>, %arg3: memref<1x7x2xf32, #tpu.memory_space<vmem>>) attributes {dimension_semantics = [#tpu.dimension_semantics<parallel>], iteration_bounds = array<i64: 2>, scalar_prefetch = 0 : i64, scratch_operands = 0 : i64, tpu.core_type = #tpu.core_type<tc>, window_params = [{transform_indices = @transform_0, window_bounds = array<i64: 1, 8, 32>}, {pipeline_mode = #tpu.pipeline_mode<synchronous>, transform_indices = @transform_1, window_bounds = array<i64: 32, 4>}, {transform_indices = @transform_2, window_bounds = array<i64: 1, 7, 2>}]} {
    %c0 = arith.constant 0 : index
    %c0_0 = arith.constant 0 : index
    %c0_1 = arith.constant 0 : index
    %0 = vector.load %arg1[%c0, %c0_0, %c0_1] : memref<1x8x32xf32, #tpu.memory_space<vmem>>, vector<1x8x32xf32>
    %1 = vector.shape_cast %0 : vector<1x8x32xf32> to vector<8x32xf32>
    %c0_2 = arith.constant 0 : index
    %c0_3 = arith.constant 0 : index
    %2 = vector.load %arg2[%c0_2, %c0_3] : memref<32x4xf32, #tpu.memory_space<vmem>>, vector<32x4xf32>
    %cst = arith.constant dense<0.000000e+00> : vector<8x4xf32>
    %3 = tpu.matmul %1, %2, %cst {dimension_numbers = #tpu.dot_dimension_numbers<[1], [0], [0], [1], [0, 0, 1, 1], [], []>} : vector<8x32xf32>, vector<32x4xf32>, vector<8x4xf32> -> vector<8x4xf32>
    %4 = vector.shape_cast %3 : vector<8x4xf32> to vector<1x8x4xf32>
    %5 = vector.extract_strided_slice %4 {offsets = [0, 0, 0], sizes = [1, 1, 4], strides = [1, 1, 1]} : vector<1x8x4xf32> to vector<1x1x4xf32>
    %6 = vector.extract_strided_slice %4 {offsets = [0, 1, 0], sizes = [1, 7, 4], strides = [1, 1, 1]} : vector<1x8x4xf32> to vector<1x7x4xf32>
    %7 = vector.extract_strided_slice %6 {offsets = [0, 0, 3], sizes = [1, 7, 1], strides = [1, 1, 1]} : vector<1x7x4xf32> to vector<1x7x1xf32>
    %8 = vector.extract_strided_slice %6 {offsets = [0, 0, 2], sizes = [1, 7, 1], strides = [1, 1, 1]} : vector<1x7x4xf32> to vector<1x7x1xf32>
    %9 = arith.subf %7, %8 : vector<1x7x1xf32>
    %10 = vector.extract_strided_slice %5 {offsets = [0, 0, 1], sizes = [1, 1, 1], strides = [1, 1, 1]} : vector<1x1x4xf32> to vector<1x1x1xf32>
    %11 = vector.extract_strided_slice %5 {offsets = [0, 0, 0], sizes = [1, 1, 1], strides = [1, 1, 1]} : vector<1x1x4xf32> to vector<1x1x1xf32>
    %12 = arith.subf %10, %11 : vector<1x1x1xf32>
    %13 = vector.broadcast %12 : vector<1x1x1xf32> to vector<1x7x1xf32>
    %14 = arith.addf %9, %13 : vector<1x7x1xf32>
    %cst_4 = arith.constant 0.000000e+00 : f32
    %15 = vector.broadcast %cst_4 : f32 to vector<1x7x1xf32>
    %16 = arith.subf %15, %14 : vector<1x7x1xf32>
    %17 = math.exp %16 : vector<1x7x1xf32>
    %cst_5 = arith.constant 1.000000e+00 : f32
    %18 = vector.broadcast %cst_5 : f32 to vector<1x7x1xf32>
    %19 = arith.addf %18, %17 : vector<1x7x1xf32>
    %20 = tpu.reciprocal %19 : vector<1x7x1xf32> -> vector<1x7x1xf32>
    %cst_6 = arith.constant 1.000000e+00 : f32
    %21 = vector.broadcast %cst_6 : f32 to vector<1x7x1xf32>
    %22 = arith.subf %21, %20 : vector<1x7x1xf32>
    %23 = tpu.concatenate %22, %20 in 2 : vector<1x7x1xf32>, vector<1x7x1xf32> -> vector<1x7x2xf32>
    %c0_7 = arith.constant 0 : index
    %c0_8 = arith.constant 0 : index
    %c0_9 = arith.constant 0 : index
    %24 = vector.load %arg3[%c0_7, %c0_8, %c0_9] : memref<1x7x2xf32, #tpu.memory_space<vmem>>, vector<1x7x2xf32>
    tpu.vector_store %arg3[%c0_7, %c0_8, %c0_9], %23 {strides = array<i32>} : memref<1x7x2xf32, #tpu.memory_space<vmem>>, vector<1x7x2xf32>,
    return
  }
  func.func @transform_0(%arg0: i32) -> (i32, i32, i32) {
    %c0_i32 = arith.constant 0 : i32
    %c0_i32_0 = arith.constant 0 : i32
    %c0_i32_1 = arith.constant 0 : i32
    return %arg0, %c0_i32, %c0_i32_0 : i32, i32, i32
  }
  func.func @transform_1(%arg0: i32) -> (i32, i32) {
    %c0_i32 = arith.constant 0 : i32
    %c0_i32_0 = arith.constant 0 : i32
    %c0_i32_1 = arith.constant 0 : i32
    return %c0_i32, %c0_i32_0 : i32, i32
  }
  func.func @transform_2(%arg0: i32) -> (i32, i32, i32) {
    %c0_i32 = arith.constant 0 : i32
    %c0_i32_0 = arith.constant 0 : i32
    %c0_i32_1 = arith.constant 0 : i32
    return %arg0, %c0_i32, %c0_i32_0 : i32, i32, i32
  }
}

</mosaic_0001>

<bundles_post_ra>
// kernel: tpu_custom_call.1
= control target key start
LH: loop header
LB: loop body
LE: loop exit
PB: predicated region body
PF: predicated region fallthrough
CT: control target
= control target key end

     0   :  { %s389_s9 = smov 0   ;;  %s422_s0 = inlined_call_operand.vmem [shape: f32[2,16,32], index: 0, kind: input, shape index: {}]   ;;  %s423_s1 = inlined_call_operand.vmem [shape: f32[32,4], index: 1, kind: input, shape index: {}]   ;;  %s424_s2 = inlined_call_operand.vmem [shape: f32[2,7,2], index: 2, kind: output, shape index: {}]  }
   0x1 LB: > { %s306_s10 = sadd.s32 4294967295, %s365_s9   ;;  %p310_p0 = scmp.ge.s32.totalorder %s365_s9, 1  ;;  %s365_s9 = sphi %s389_s9, %s12_s9  }
   0x2   : > { %p112_p1 = scmp.lt.s32.totalorder %s365_s9, 3 }
   0x4   : > { %p113_p2 = pnand %p310_p0, %p112_p1 }
   0x5   : > { %v143_v0 = vld [vmem:[%s423_s1] sm:$0xff] (!%p113_p2)  ;;  %v144_v1 = vld [vmem:[%s423_s1 + $0x8] sm:$0xff] (!%p113_p2)  ;;  %v145_v2 = vld [vmem:[%s423_s1 + $0x10] sm:$0xff] (!%p113_p2)  ;;  %v367_v3 = vmov (!%p113_p2), 0.0|0.0   ;;  %vm368_vm0 = vmmov (!%p113_p2), 0   ;;  %v369_v6 = vmov (!%p113_p2), 0.0   ;;  %v226_v11 = vlaneseq (!%p113_p2) }
   0x6   : > { %116 = sbr.rel (%p113_p2) target bundleno = 616 (0x268), region = 28  ;;  %334 = vmatprep.subr.bf16.mxu0 (!%p113_p2), %v367_v3  ;;  %v335_v4 = vpack.c.bf16 (!%p113_p2), %v144_v1, %v143_v0  ;;  %v146_v5 = vld [vmem:[%s423_s1 + $0x18] sm:$0xff] (!%p113_p2)  ;;  %331 = vmatprep.mubr.msk.f32.mxu0 (!%p113_p2), %vm368_vm0, %v369_v6  ;;  %p133_p3 = scmp.lt.s32.totalorder (!%p113_p2), %s306_s10, 1  ;;  %vm147_vm1 = vcmask (!%p113_p2), 261120   ;;  %vm249_vm2 = vcmask (!%p113_p2), 7168   ;;  %vm251_vm3 = vcmask (!%p113_p2), 15361  }
   0x7   : > { %v338_v7 = vpack.c.bf16 (!%p113_p2), %v146_v5, %v145_v2  ;;  %s370_s23 = smov (!%p113_p2), 1   ;;  %v227_v12 = vshrl.u32 (!%p113_p2), %v226_v11, 7  ;;  %s371_s24 = smov (!%p113_p2), 2  }
   0x8   : > { %336 = vmatpush3.bf16.msra.mxu0 (!%p113_p2), %v335_v4  ;;  %s372_s25 = smov (!%p113_p2), 125   ;;  %s373_s26 = smov (!%p113_p2), 126  }
   0x9   : > { %337 = vmatprep.subr.bf16.mxu0 (!%p113_p2), %v367_v3  ;;  %v228_v13 = vsub.s32 (!%p113_p2), 0, %v227_v12 }
   0xc   : > { %339 = vmatpush3.bf16.msra.mxu0 (!%p113_p2), %v338_v7 }
   0xd   : > { %s426_s10 = smov (!%p133_p3, %s306_s10), 1 }
   0xe   : > { %s317_s19 = sshll.u32 %s426_s10, 4  ;;  %s313_s27 = sshll.u32 %s426_s10, 3 }
   0xf   : > { %s137_s22 = scalar_lea.vmem %s422_s0, %s317_s19  ;;  %s141_s30 = scalar_lea.vmem %s424_s2, %s313_s27 }
  0x10   : > { %v142_v8 = vld [vmem:[%s137_s22] sm:$0xff] }
  0x11   : > { %332 = vmatmul.mubr.msk.f32.vlgmr.msra.gmra.mrb[0].mxu0 %vm147_vm1, %v142_v8 }
  0xe4   : > { %v217_v9 = vpop.f32.mrb[0].mxu0 }
  0xe5   : > { %222 = vrot.lane.b32.xlu0 %v217_v9, %s370_s23  ;;  %v333_v10 = vpop.f32.mrb[1].mxu0 }
 0x157   : > { %v223_v14 = vpop.permute.xlu0 %222 }
 0x158   : > { %v225_v15 = vsub.f32 %v217_v9, %v223_v14 }
 0x15a   : > { %v229_v16 = vrot.slane %v225_v15, %v228_v13 }
 0x15c   : > { %231 = vrot.lane.b32.xlu0 %v229_v16, %s371_s24 }
 0x1ce   : > { %v232_v17 = vpop.permute.xlu0 %231 }
 0x1cf   : > { %v234_v18 = vadd.f32 %v232_v17, %v225_v15 }
 0x1d1   : > { %v235_v19 = vsub.f32 0.0, %v234_v18 }
 0x1d3   : > { %v236_v20 = vmul.f32 1.442695, %v235_v19 }
 0x1d5   : > { %355 = vpow2.f32 %v236_v20 }
 0x1df   : > { %v356_v21 = vpop.eup %355 }
 0x1e0   : > { %v238_v22 = vadd.f32 1.0, %v356_v21 }
 0x1e2   : > { %357 = vrcp.f32 %v238_v22 }
 0x1ec   : > { %v358_v23 = vpop.eup %357 }
 0x1ed   : > { %v240_v24 = vsub.f32 1.0, %v358_v23 }
 0x1ef   : > { %242 = vrot.lane.b32.xlu1 %v240_v24, %s372_s25 }
 0x1f3   : > { %246 = vrot.lane.b32.xlu1 %v358_v23, %s373_s26 }
 0x261   : > { %v243_v25 = vpop.permute.xlu1 %242 }
 0x265   : > { %v247_v26 = vpop.permute.xlu1 %246 }
 0x266   : > { %v250_v27 = vsel %vm249_vm2, %v243_v25, %v247_v26 }
 0x267   : > { %252 = vst.msk [vmem:[%s141_s30 - $0x1] sm:$0xfe] %vm251_vm3, %v250_v27 }
 0x268 PF: > { %s12_s9 = sadd.s32 1, %s365_s9  }
 0x269   : > { %p9_p4 = scmp.ge.s32.totalorder %s12_s9, 4  }
 0x26b   :  { %11 = sbr.rel (!%p9_p4) target bundleno = 1 (0x1), region = 58 }

</bundles_post_ra>
